<compile_context>
chip_gen: v5e
topology: v5e:2x2
jax: 0.10.0
libtpu: 0.0.40
codegen_flags: <defaults>
</compile_context>

<pallas_src>
import functools

import jax
import jax.numpy as jnp
from jax import lax
from jax.experimental import pallas as pl
from jax.experimental.pallas import tpu as pltpu


def _round_up(x, m):
    return ((x + m - 1) // m) * m


def _ce_kernel(dec_ref, tgt_ref, out_ref, sum_ref, cnt_ref, *,
               ignore_index, num_rows, block_rows, mean):
    i = pl.program_id(0)

    @pl.when(i == 0)
    def _init():
        sum_ref[...] = jnp.zeros_like(sum_ref)
        cnt_ref[...] = jnp.zeros_like(cnt_ref)

    x = dec_ref[...].astype(jnp.float32)            # (B_blk, C)
    tgt = tgt_ref[...]                              # (B_blk, 1) int32
    bb, c = x.shape

    # numerically stable logsumexp over the class (lane) dim
    m = jnp.max(x, axis=1, keepdims=True)
    lse = m + jnp.log(jnp.sum(jnp.exp(x - m), axis=1, keepdims=True))   # (B_blk, 1)

    # x[row, tgt[row]] via one-hot select + lane reduce (no gather on TPU)
    cls_idx = lax.broadcasted_iota(jnp.int32, (bb, c), 1)
    picked = jnp.sum(jnp.where(cls_idx == tgt, x, 0.0), axis=1, keepdims=True)

    # valid = real row of the (possibly padded) last block and not ignore_index
    row_idx = i * block_rows + lax.broadcasted_iota(jnp.int32, (bb, 1), 0)
    valid = (tgt != ignore_index) & (row_idx < num_rows)

    per_tok = lse - picked                          # (B_blk, 1)
    sum_ref[...] += jnp.sum(jnp.where(valid, per_tok, 0.0), keepdims=True)
    cnt_ref[...] += jnp.sum(valid.astype(jnp.float32), keepdims=True)

    @pl.when(i == pl.num_programs(0) - 1)
    def _finalize():
        if mean:
            out_ref[...] = sum_ref[...] / cnt_ref[...]
        else:
            out_ref[...] = sum_ref[...]


def cross_entropy_loss(decoder_log_probs, targets, *,
                       reduction="mean", ignore_index=-100):
    reduction = reduction.lower()
    if reduction not in ("mean", "sum"):
        # TODO(synk): reduction='none' (per-token unreduced output) not
        # implemented; the module under test uses the default 'mean'.
        raise NotImplementedError(f"reduction={reduction!r}")

    b, c = decoder_log_probs.shape
    tgt_flat = targets.reshape(-1, 1).astype(jnp.int32)   # targets.view(-1)
    if tgt_flat.shape[0] != b:
        raise ValueError("targets must flatten to decoder_log_probs.shape[0]")

    # Block rows: lane-dense full-C blocks, sublane-aligned rows, sized so the
    # double-buffered logits block stays well inside v7x's 64 MiB VMEM.
    itemsize = jnp.dtype(decoder_log_probs.dtype).itemsize
    bytes_per_row = c * itemsize + 4
    row_budget = max(8, (4 * 1024 * 1024) // bytes_per_row)
    b_blk = min(1024, (row_budget // 8) * 8)
    b_blk = max(8, min(b_blk, _round_up(b, 8)))
    grid = (pl.cdiv(b, b_blk),)

    blk_bytes = b_blk * bytes_per_row
    vmem_limit = int(min(64 * 1024 * 1024,
                         max(16 * 1024 * 1024, 4 * blk_bytes + (2 << 20))))

    kernel = functools.partial(
        _ce_kernel, ignore_index=ignore_index, num_rows=b,
        block_rows=b_blk, mean=(reduction == "mean"))

    out = pl.pallas_call(
        kernel,
        out_shape=jax.ShapeDtypeStruct((1, 1), jnp.float32),
        grid_spec=pltpu.PrefetchScalarGridSpec(
            num_scalar_prefetch=0,
            grid=grid,
            in_specs=[pl.BlockSpec((b_blk, c), lambda i: (i, 0)),
                      pl.BlockSpec((b_blk, 1), lambda i: (i, 0))],
            out_specs=pl.BlockSpec((1, 1), lambda i: (0, 0)),
            scratch_shapes=[pltpu.VMEM((1, 1), jnp.float32),
                            pltpu.VMEM((1, 1), jnp.float32)]),
        compiler_params=pltpu.CompilerParams(
            dimension_semantics=("arbitrary",),
            vmem_limit_bytes=vmem_limit),
    )(decoder_log_probs, tgt_flat)
    return out[0, 0]


if __name__ == "__main__":
    key = jax.random.PRNGKey(0)
    N, S, C = 2, 8, 32                      # batch, decoder steps, classes
    k1, k2 = jax.random.split(key)
    decoder_log_probs = jax.nn.log_softmax(
        jax.random.normal(k1, (N * S, C), jnp.float32), axis=-1)
    targets = jax.random.randint(k2, (N, S), 0, C, jnp.int32)

    loss = cross_entropy_loss(decoder_log_probs, targets)
    jax.block_until_ready(loss)

    # pure-JAX reference of nn.CrossEntropyLoss semantics (log_softmax + NLL, mean)
    tgt = targets.reshape(-1)
    ref = jnp.mean(jax.nn.logsumexp(decoder_log_probs, axis=1)
                   - jnp.take_along_axis(decoder_log_probs, tgt[:, None], axis=1)[:, 0])

    assert bool(jnp.isfinite(loss))
    assert bool(jnp.abs(loss - ref) < 1e-4), (float(loss), float(ref))
    print("KERNEL_OK")
</pallas_src>

<mosaic_0001>
module attributes {stable_mosaic.version = 11 : i64} {
  func.func @_ce_kernel(%arg0: i32, %arg1: memref<16x32xf32, #tpu.memory_space<vmem>>, %arg2: memref<16x1xi32, #tpu.memory_space<vmem>>, %arg3: memref<1x1xf32, #tpu.memory_space<vmem>>, %arg4: memref<1x1xf32, #tpu.memory_space<vmem>>, %arg5: memref<1x1xf32, #tpu.memory_space<vmem>>) attributes {dimension_semantics = [#tpu.dimension_semantics<arbitrary>], iteration_bounds = array<i64: 1>, scalar_prefetch = 0 : i64, scratch_operands = 2 : i64, tpu.core_type = #tpu.core_type<tc>, window_params = [{transform_indices = @transform_0, window_bounds = array<i64: 16, 32>}, {transform_indices = @transform_1, window_bounds = array<i64: 16, 1>}, {pipeline_mode = #tpu.pipeline_mode<synchronous>, transform_indices = @transform_2, window_bounds = array<i64: 1, 1>}]} {
    %c0_i32 = arith.constant 0 : i32
    %0 = arith.cmpi eq, %arg0, %c0_i32 : i32
    %1 = arith.extui %0 : i1 to i32
    %c0_i32_0 = arith.constant 0 : i32
    %2 = arith.cmpi ne, %1, %c0_i32_0 : i32
    scf.if %2 {
      %cst_21 = arith.constant 0.000000e+00 : f32
      %54 = vector.broadcast %cst_21 : f32 to vector<1x1xf32>
      %c0_22 = arith.constant 0 : index
      %c0_23 = arith.constant 0 : index
      %55 = vector.load %arg4[%c0_22, %c0_23] : memref<1x1xf32, #tpu.memory_space<vmem>>, vector<1x1xf32>
      tpu.vector_store %arg4[%c0_22, %c0_23], %54 {strides = array<i32>} : memref<1x1xf32, #tpu.memory_space<vmem>>, vector<1x1xf32>,
      %cst_24 = arith.constant 0.000000e+00 : f32
      %56 = vector.broadcast %cst_24 : f32 to vector<1x1xf32>
      %c0_25 = arith.constant 0 : index
      %c0_26 = arith.constant 0 : index
      %57 = vector.load %arg5[%c0_25, %c0_26] : memref<1x1xf32, #tpu.memory_space<vmem>>, vector<1x1xf32>
      tpu.vector_store %arg5[%c0_25, %c0_26], %56 {strides = array<i32>} : memref<1x1xf32, #tpu.memory_space<vmem>>, vector<1x1xf32>,
    } else {
    }
    %c0 = arith.constant 0 : index
    %c0_1 = arith.constant 0 : index
    %3 = vector.load %arg1[%c0, %c0_1] : memref<16x32xf32, #tpu.memory_space<vmem>>, vector<16x32xf32>
    %c0_2 = arith.constant 0 : index
    %c0_3 = arith.constant 0 : index
    %4 = vector.load %arg2[%c0_2, %c0_3] : memref<16x1xi32, #tpu.memory_space<vmem>>, vector<16x1xi32>
    %cst = arith.constant dense<0xFF800000> : vector<16xf32>
    %5 = vector.multi_reduction <maximumf>, %3, %cst [1] : vector<16x32xf32> to vector<16xf32>
    %6 = vector.shape_cast %5 : vector<16xf32> to vector<16x1xf32>
    %7 = vector.broadcast %6 : vector<16x1xf32> to vector<16x32xf32>
    %8 = arith.subf %3, %7 : vector<16x32xf32>
    %9 = math.exp %8 : vector<16x32xf32>
    %cst_4 = arith.constant dense<0.000000e+00> : vector<16xf32>
    %10 = vector.multi_reduction <add>, %9, %cst_4 [1] : vector<16x32xf32> to vector<16xf32>
    %11 = vector.shape_cast %10 : vector<16xf32> to vector<16x1xf32>
    %12 = math.log %11 : vector<16x1xf32>
    %13 = arith.addf %6, %12 : vector<16x1xf32>
    %14 = tpu.iota {dimensions = array<i32: 1>} : vector<16x32xi32>
    %15 = vector.broadcast %4 : vector<16x1xi32> to vector<16x32xi32>
    %16 = arith.cmpi eq, %14, %15 : vector<16x32xi32>
    %cst_5 = arith.constant 0.000000e+00 : f32
    %17 = vector.broadcast %cst_5 : f32 to vector<16x32xf32>
    %18 = arith.select %16, %3, %17 : vector<16x32xi1>, vector<16x32xf32>
    %cst_6 = arith.constant dense<0.000000e+00> : vector<16xf32>
    %19 = vector.multi_reduction <add>, %18, %cst_6 [1] : vector<16x32xf32> to vector<16xf32>
    %20 = vector.shape_cast %19 : vector<16xf32> to vector<16x1xf32>
    %c16_i32 = arith.constant 16 : i32
    %21 = arith.muli %arg0, %c16_i32 : i32
    %22 = tpu.iota {dimensions = array<i32: 0>} : vector<16x1xi32>
    %23 = vector.broadcast %21 : i32 to vector<16x1xi32>
    %24 = arith.addi %23, %22 : vector<16x1xi32>
    %c-100_i32 = arith.constant -100 : i32
    %25 = vector.broadcast %c-100_i32 : i32 to vector<16x1xi32>
    %26 = arith.cmpi ne, %4, %25 : vector<16x1xi32>
    %c16_i32_7 = arith.constant 16 : i32
    %27 = vector.broadcast %c16_i32_7 : i32 to vector<16x1xi32>
    %28 = arith.cmpi slt, %24, %27 : vector<16x1xi32>
    %29 = arith.andi %26, %28 : vector<16x1xi1>
    %30 = arith.subf %13, %20 : vector<16x1xf32>
    %c0_8 = arith.constant 0 : index
    %c0_9 = arith.constant 0 : index
    %31 = vector.load %arg4[%c0_8, %c0_9] : memref<1x1xf32, #tpu.memory_space<vmem>>, vector<1x1xf32>
    %cst_10 = arith.constant 0.000000e+00 : f32
    %32 = vector.broadcast %cst_10 : f32 to vector<16x1xf32>
    %33 = arith.select %29, %30, %32 : vector<16x1xi1>, vector<16x1xf32>
    %34 = vector.shape_cast %33 : vector<16x1xf32> to vector<1x16x1xf32>
    %cst_11 = arith.constant dense<0.000000e+00> : vector<1xf32>
    %35 = vector.multi_reduction <add>, %34, %cst_11 [1, 2] : vector<1x16x1xf32> to vector<1xf32>
    %36 = vector.shape_cast %35 : vector<1xf32> to vector<1x1x1xf32>
    %37 = vector.extract %36[0, 0, 0] : f32 from vector<1x1x1xf32>
    %38 = vector.broadcast %37 : f32 to vector<1x1xf32>
    %39 = arith.addf %31, %38 : vector<1x1xf32>
    %c0_12 = arith.constant 0 : index
    %c0_13 = arith.constant 0 : index
    %40 = vector.load %arg4[%c0_12, %c0_13] : memref<1x1xf32, #tpu.memory_space<vmem>>, vector<1x1xf32>
    tpu.vector_store %arg4[%c0_12, %c0_13], %39 {strides = array<i32>} : memref<1x1xf32, #tpu.memory_space<vmem>>, vector<1x1xf32>,
    %c0_14 = arith.constant 0 : index
    %c0_15 = arith.constant 0 : index
    %41 = vector.load %arg5[%c0_14, %c0_15] : memref<1x1xf32, #tpu.memory_space<vmem>>, vector<1x1xf32>
    %42 = arith.extui %29 : vector<16x1xi1> to vector<16x1xi32>
    %43 = arith.sitofp %42 : vector<16x1xi32> to vector<16x1xf32>
    %44 = vector.shape_cast %43 : vector<16x1xf32> to vector<1x16x1xf32>
    %cst_16 = arith.constant dense<0.000000e+00> : vector<1xf32>
    %45 = vector.multi_reduction <add>, %44, %cst_16 [1, 2] : vector<1x16x1xf32> to vector<1xf32>
    %46 = vector.shape_cast %45 : vector<1xf32> to vector<1x1x1xf32>
    %47 = vector.extract %46[0, 0, 0] : f32 from vector<1x1x1xf32>
    %48 = vector.broadcast %47 : f32 to vector<1x1xf32>
    %49 = arith.addf %41, %48 : vector<1x1xf32>
    %c0_17 = arith.constant 0 : index
    %c0_18 = arith.constant 0 : index
    %50 = vector.load %arg5[%c0_17, %c0_18] : memref<1x1xf32, #tpu.memory_space<vmem>>, vector<1x1xf32>
    tpu.vector_store %arg5[%c0_17, %c0_18], %49 {strides = array<i32>} : memref<1x1xf32, #tpu.memory_space<vmem>>, vector<1x1xf32>,
    %c0_i32_19 = arith.constant 0 : i32
    %51 = arith.cmpi eq, %arg0, %c0_i32_19 : i32
    %52 = arith.extui %51 : i1 to i32
    %c0_i32_20 = arith.constant 0 : i32
    %53 = arith.cmpi ne, %52, %c0_i32_20 : i32
    scf.if %53 {
      %c0_21 = arith.constant 0 : index
      %c0_22 = arith.constant 0 : index
      %54 = vector.load %arg4[%c0_21, %c0_22] : memref<1x1xf32, #tpu.memory_space<vmem>>, vector<1x1xf32>
      %c0_23 = arith.constant 0 : index
      %c0_24 = arith.constant 0 : index
      %55 = vector.load %arg5[%c0_23, %c0_24] : memref<1x1xf32, #tpu.memory_space<vmem>>, vector<1x1xf32>
      %56 = arith.divf %54, %55 : vector<1x1xf32>
      %c0_25 = arith.constant 0 : index
      %c0_26 = arith.constant 0 : index
      %57 = vector.load %arg3[%c0_25, %c0_26] : memref<1x1xf32, #tpu.memory_space<vmem>>, vector<1x1xf32>
      tpu.vector_store %arg3[%c0_25, %c0_26], %56 {strides = array<i32>} : memref<1x1xf32, #tpu.memory_space<vmem>>, vector<1x1xf32>,
    } else {
    }
    return
  }
  func.func @transform_0(%arg0: i32) -> (i32, i32) {
    %c0_i32 = arith.constant 0 : i32
    %c0_i32_0 = arith.constant 0 : i32
    return %arg0, %c0_i32 : i32, i32
  }
  func.func @transform_1(%arg0: i32) -> (i32, i32) {
    %c0_i32 = arith.constant 0 : i32
    %c0_i32_0 = arith.constant 0 : i32
    return %arg0, %c0_i32 : i32, i32
  }
  func.func @transform_2(%arg0: i32) -> (i32, i32) {
    %c0_i32 = arith.constant 0 : i32
    %c0_i32_0 = arith.constant 0 : i32
    %c0_i32_1 = arith.constant 0 : i32
    return %c0_i32, %c0_i32_0 : i32, i32
  }
}

</mosaic_0001>

<bundles_post_ra>
// kernel: tpu_custom_call.1
= control target key start
LH: loop header
LB: loop body
LE: loop exit
PB: predicated region body
PF: predicated region fallthrough
CT: control target
= control target key end

     0   :  { %vm23_vm0 = vcmask 261120   ;;  %v205_v3 = vmov 0   ;;  %s263_s0 = inlined_call_operand.vmem [shape: f32[16,32], index: 0, kind: input, shape index: {}]   ;;  %s264_s1 = inlined_call_operand.vmem [shape: s32[16,1], index: 1, kind: input, shape index: {}]   ;;  %s265_s2 = inlined_call_operand.hbm [shape: f32[1,1], index: 2, kind: output, shape index: {}]  }
   0x1   :  { %v19_v0 = vld [vmem:[%s263_s0] sm:$0xff]  ;;  %167 = vset.pattern.permute.xlu1 %v205_v3  ;;  %168 = vset.pattern.permute.xlu0 %v205_v3 }
   0x2   :  { %v229_v1 = vld [vmem:[%s264_s1] sm:$0xff]  ;;  %v24_v2 = vsel %vm23_vm0, %v19_v0, -inf }
   0x3   :  { %7 = vsyncpa [#allocation5], 0  ;;  %25 = vmax.xlane.f32.xlu0 %v24_v2  ;;  %51 = vperm.xlu1 %167, %v229_v1   ;;  %v20_v4 = vld [vmem:[%s263_s0 + $0x8] sm:$0xff]  ;;  %v48_v7 = vlaneseq  ;;  %vm73_vm3 = vcmp.ne.s32.totalorder %v229_v1, 4294967196  ;;  %v206_v25 = vmov 0.0   ;;  %vm84_vm5 = vcmask 7168  }
   0x4   :  { %v27_v5 = vsel %vm23_vm0, %v20_v4, -inf  ;;  %v22_v6 = vld [vmem:[%s264_s1 + $0x8] sm:$0xff]  ;;  %v158_v26 = vsel %vm73_vm3, 1.0, %v206_v25  ;;  %vm16_vm6 = vcmask 0   ;;  %s207_s17 = smov [#allocation4]   ;;  %s149_s21 = sshll.u32 %s265_s2, 4  ;;  %s150_s21 = int_to_ptr.hbm [resolvable:$true] %s149_s21 }
   0x5   :  { %v49_v8 = vand.u32 127, %v48_v7  ;;  %vm74_vm4 = vcmp.ne.s32.totalorder %v22_v6, 4294967196  ;;  %v106_v28 = vsel %vm84_vm5, %v158_v26, 0.0  ;;  %17 = vst.msk [vmem:[#allocation2] sm:$0x1] %vm16_vm6, %v206_v25  ;;  %s147_s18 = sshll.u32 %s207_s17, 4  ;;  %s148_s18 = int_to_ptr.vmem [resolvable:$true] %s147_s18 }
   0x6   :  { %v159_v27 = vsel %vm74_vm4, 1.0, %v206_v25  ;;  %18 = vst.msk [vmem:[#allocation3] sm:$0x1] %vm16_vm6, %v206_v25 }
   0x7   :  { %v107_v29 = vsel %vm84_vm5, %v159_v27, 0.0 }
   0x8   :  { %v108_v30 = vadd.f32 %v107_v29, %v106_v28 }
   0xb   :  { %28 = vmax.xlane.f32.xlu0 %v27_v5  ;;  %54 = vperm.xlu1 %167, %v22_v6  }
   0xc   :  { %v81_v62 = vld [vmem:[#allocation2] sm:$0x1] }
   0xd   :  { %v101_v63 = vld [vmem:[#allocation3] sm:$0x1] }
  0x75   :  { %v52_v9 = vpop.permute.xlu1 %51 }
  0x76   :  { %v26_v10 = vpop.xlane.xlu0 %25  ;;  %vm56_vm1 = vcmp.eq.s32.totalorder %v49_v8, %v52_v9 }
  0x77   :  { %v30_v11 = vsub.f32 %v19_v0, %v26_v10  ;;  %v58_v12 = vsel %vm56_vm1, %v19_v0, 0.0 }
  0x78   :  { %v60_v13 = vsel %vm23_vm0, %v58_v12, 0.0 }
  0x79   :  { %v32_v14 = vmul.f32 1.442695, %v30_v11  ;;  %61 = vadd.xlane.f32.xlu0 %v60_v13 }
  0x7b   :  { %169 = vpow2.f32 %v32_v14 }
  0x7d   :  { %v55_v15 = vpop.permute.xlu1 %54 }
  0x7e   :  { %v29_v16 = vpop.xlane.xlu0 %28  ;;  %vm57_vm2 = vcmp.eq.s32.totalorder %v49_v8, %v55_v15 }
  0x7f   :  { %v31_v17 = vsub.f32 %v20_v4, %v29_v16  ;;  %v59_v18 = vsel %vm57_vm2, %v20_v4, 0.0 }
  0x80   :  { %v63_v19 = vsel %vm23_vm0, %v59_v18, 0.0 }
  0x81   :  { %v170_v20 = vpop.eup %169  ;;  %v34_v21 = vmul.f32 1.442695, %v31_v17  ;;  %64 = vadd.xlane.f32.xlu1 %v63_v19  ;;  %109 = vadd.xlane.f32.xlu0 %v108_v30 }
  0x82   :  { %v36_v22 = vsel %vm23_vm0, %v170_v20, 0.0 }
  0x83   :  { %171 = vpow2.f32 %v34_v21  ;;  %37 = vadd.xlane.f32.xlu2 %v36_v22 }
  0x89   :  { %v172_v23 = vpop.eup %171 }
  0x8a   :  { %v39_v24 = vsel %vm23_vm0, %v172_v23, 0.0 }
  0x8b   :  { %40 = vadd.xlane.f32.xlu2 %v39_v24 }
  0xec   :  { %v62_v36 = vpop.xlane.xlu0 %61 }
  0xf4   :  { %v65_v41 = vpop.xlane.xlu1 %64  ;;  %v110_v48 = vpop.xlane.xlu0 %109 }
  0xf5   :  { %v111_v49 = vrot.slane %v110_v48, 4 }
  0xf6   :  { %v38_v31 = vpop.xlane.xlu2 %37 }
  0xf7   :  { %173 = vlog2.f32 %v38_v31  ;;  %v112_v50 = vadd.f32 %v111_v49, %v110_v48 }
  0xf9   :  { %v113_v51 = vrot.slane %v112_v50, 2 }
  0xfb   :  { %v114_v55 = vadd.f32 %v113_v51, %v112_v50 }
  0xfd   :  { %v174_v32 = vpop.eup %173  ;;  %v115_v58 = vrot.slane %v114_v55, 1 }
  0xfe   :  { %v43_v33 = vmul.f32 0.6931472, %v174_v32  ;;  %v41_v34 = vpop.xlane.xlu2 %40 }
  0xff   :  { %175 = vlog2.f32 %v41_v34  ;;  %v116_v61 = vadd.f32 %v115_v58, %v114_v55 }
 0x100   :  { %v46_v35 = vadd.f32 %v43_v33, %v26_v10 }
 0x102   :  { %v79_v39 = vsub.f32 %v46_v35, %v62_v36 }
 0x104   :  { %v82_v43 = vsel %vm73_vm3, %v79_v39, 0.0 }
 0x105   :  { %v176_v37 = vpop.eup %175  ;;  %v85_v45 = vsel %vm84_vm5, %v82_v43, 0.0 }
 0x106   :  { %v45_v38 = vmul.f32 0.6931472, %v176_v37 }
 0x108   :  { %v47_v40 = vadd.f32 %v45_v38, %v29_v16 }
 0x10a   :  { %v80_v42 = vsub.f32 %v47_v40, %v65_v41 }
 0x10c   :  { %v83_v44 = vsel %vm74_vm4, %v80_v42, 0.0 }
 0x10d   :  { %v86_v46 = vsel %vm84_vm5, %v83_v44, 0.0 }
 0x10e   :  { %v87_v47 = vadd.f32 %v86_v46, %v85_v45 }
 0x110   :  { %88 = vadd.xlane.f32.xlu2 %v87_v47 }
 0x183   :  { %v89_v52 = vpop.xlane.xlu2 %88 }
 0x184   :  { %v90_v53 = vrot.slane %v89_v52, 4 }
 0x186   :  { %v91_v54 = vadd.f32 %v90_v53, %v89_v52 }
 0x188   :  { %v92_v56 = vrot.slane %v91_v54, 2 }
 0x18a   :  { %v93_v57 = vadd.f32 %v92_v56, %v91_v54 }
 0x18c   :  { %v94_v59 = vrot.slane %v93_v57, 1 }
 0x18e   :  { %v95_v60 = vadd.f32 %v94_v59, %v93_v57 }
 0x190   :  { %160 = vpush %v95_v60 }
 0x191   :  { %162 = vpush %v116_v61 }
 0x1c1   :  { %s161_s0 = spop %160 }
 0x1c2   :  { %v97_v0 = vstv %s161_s0  ;;  %s163_s1 = spop %162 }
 0x1c3   :  { %v98_v1 = vadd.f32 %v97_v0, %v81_v62  ;;  %v118_v2 = vstv %s163_s1 }
 0x1c4   :  { %v119_v3 = vadd.f32 %v118_v2, %v101_v63 }
 0x1c5   :  { %100 = vst.msk [vmem:[#allocation2] sm:$0x1] %vm16_vm6, %v98_v1 }
 0x1c6   :  { %120 = vst.msk [vmem:[#allocation3] sm:$0x1] %vm16_vm6, %v119_v3 }
 0x1cc   :  { %v124_v14 = vld [vmem:[#allocation2] sm:$0x1] }
 0x1cd   :  { %v125_v4 = vld [vmem:[#allocation3] sm:$0x1] }
 0x1ce   :  { %177 = vrcp.f32 %v125_v4  ;;  %v137_v8 = vand.u32 2147483648, %v125_v4  ;;  %v135_v10 = vand.u32 2147483647, %v125_v4  ;;  %vm131_vm8 = vweird.f32 %v125_v4 }
 0x1d0   :  { %v138_v12 = vor.u32 1.1754944e-38, %v137_v8  ;;  %vm136_vm10 = vcmp.eq.f32.partialorder %v135_v10, 8.507059e+37 }
 0x1d4   :  { %v178_v5 = vpop.eup %177 }
 0x1d5   :  { %v127_v6 = vmul.f32 %v178_v5, %v125_v4  ;;  %vm132_vm7 = vweird.f32 %v178_v5 }
 0x1d6   :  { %vm133_vm9 = vmor %vm131_vm8, %vm132_vm7 }
 0x1d7   :  { %v128_v7 = vsub.f32 1.0, %v127_v6 }
 0x1d9   :  { %v129_v9 = vmul.f32 %v178_v5, %v128_v7 }
 0x1db   :  { %v130_v11 = vadd.f32 %v178_v5, %v129_v9 }
 0x1dd   :  { %v134_v13 = vsel %vm133_vm9, %v178_v5, %v130_v11 }
 0x1de   :  { %v139_v15 = vsel %vm136_vm10, %v138_v12, %v134_v13 }
 0x1df   :  { %v140_v16 = vmul.f32 %v139_v15, %v124_v14 }
 0x1e1   :  { %141 = vst.msk [vmem:[#allocation4] sm:$0x1] %vm16_vm6, %v140_v16 }
 0x1e2   :  { %152 = dma.vmem_to_hbm [thread:$0]  %s148_s18, 16, %s150_s21, [#allocation5]  }
 0x1e3   :  { %203 = dma.done.wait [#allocation5], 16  }
 0x1e4   :  { %204 = vsyncadd [#allocation5], 4294967280 }
 0x1e5   :  { %157 = vsyncpa [#allocation5], 1 }

</bundles_post_ra>
